<compile_context>
chip_gen: v7x
topology: tpu7x:2x2x1
jax: 0.10.0
libtpu: 0.0.40
codegen_flags: <defaults>
</compile_context>

<pallas_src>
import jax
import jax.numpy as jnp
from jax.experimental import pallas as pl
from jax.experimental.pallas import tpu as pltpu

LANE = 128


def _round_up(n, m):
    return ((n + m - 1) // m) * m


def mlp_kernel(x_ref, w1_ref, b1_ref, w2_ref, b2_ref, w3_ref, b3_ref, out_ref):
    # x arrives f32 (unpadded feature dim); cast to bf16 for the MXU here.
    # All bias-add / ReLU / log-softmax elementwise stays in f32 (v5e-safe).
    x = x_ref[...].astype(jnp.bfloat16)

    # Linear 1 + ReLU
    h = jnp.dot(x, w1_ref[...], preferred_element_type=jnp.float32) + b1_ref[...]
    h = jnp.maximum(h, 0.0)

    # Linear 2 + ReLU   (dropout=0 -> no-op, eval semantics)
    h = jnp.dot(h.astype(jnp.bfloat16), w2_ref[...],
                preferred_element_type=jnp.float32) + b2_ref[...]
    h = jnp.maximum(h, 0.0)

    # Linear 3 + LogSoftmax over the feature axis.
    # Padded output columns carry a -1e30 bias -> exp()==0, so the row-wise
    # max / sum are unaffected by the lane padding.
    z = jnp.dot(h.astype(jnp.bfloat16), w3_ref[...],
                preferred_element_type=jnp.float32) + b3_ref[...]
    m = jnp.max(z, axis=-1, keepdims=True)
    shifted = z - m
    lse = jnp.log(jnp.sum(jnp.exp(shifted), axis=-1, keepdims=True))
    logp = shifted - lse

    # Store only the real output columns (out_dim-wide HBM writeback).
    out_dim = out_ref.shape[-1]
    out_ref[...] = logp[:, :out_dim].astype(out_ref.dtype)


def prepare_params(params):
    """One-time parameter prep (call once per parameter set, NOT per forward):
    transpose PyTorch (out, in) weights to (in, out), zero-pad hidden/output
    feature dims to lane width, cast weights to bf16, pad biases (padded
    output lanes get -1e30 so log-softmax ignores them)."""
    in_dim = params["w1"].shape[1]
    h1 = params["w1"].shape[0]
    h2 = params["w2"].shape[0]
    out_dim = params["w3"].shape[0]

    h1_p = _round_up(h1, LANE)
    h2_p = _round_up(h2, LANE)
    out_p = _round_up(out_dim, LANE)

    def pad2(w, rows, cols):
        return jnp.pad(w, ((0, rows - w.shape[0]), (0, cols - w.shape[1])))

    w1 = pad2(params["w1"].T, in_dim, h1_p).astype(jnp.bfloat16)   # (in, h1_p)
    w2 = pad2(params["w2"].T, h1_p, h2_p).astype(jnp.bfloat16)     # (h1_p, h2_p)
    w3 = pad2(params["w3"].T, h2_p, out_p).astype(jnp.bfloat16)    # (h2_p, out_p)

    b1 = jnp.pad(params["b1"], (0, h1_p - h1))[None, :].astype(jnp.float32)
    b2 = jnp.pad(params["b2"], (0, h2_p - h2))[None, :].astype(jnp.float32)
    b3 = jnp.pad(params["b3"], (0, out_p - out_dim),
                 constant_values=-1e30)[None, :].astype(jnp.float32)

    return dict(w1=w1, b1=b1, w2=w2, b2=b2, w3=w3, b3=b3,
                in_dim=in_dim, out_dim=out_dim,
                h1_p=h1_p, h2_p=h2_p, out_p=out_p)


def mlp_forward(x, prepared, *, batch_tile=None):
    """x: (B, in_dim) f32. `prepared` comes from prepare_params()."""
    B, in_dim = x.shape
    assert in_dim == prepared["in_dim"]
    out_dim = prepared["out_dim"]
    h1_p, h2_p, out_p = prepared["h1_p"], prepared["h2_p"], prepared["out_p"]
    w1, b1 = prepared["w1"], prepared["b1"]
    w2, b2 = prepared["w2"], prepared["b2"]
    w3, b3 = prepared["w3"], prepared["b3"]

    # Batch tile: multiple of 8 (f32 sublane), aim for >= 4 grid steps so the
    # "parallel" axis can shard across v7x's two TensorCores and the x DMA
    # pipelines; cap at 1024 rows (per-step VMEM stays tiny everywhere).
    if batch_tile is None:
        tb = _round_up(pl.cdiv(B, 4), 8)
        tb = max(8, min(1024, tb))
    else:
        tb = max(8, _round_up(batch_tile, 8))
    B_p = _round_up(B, tb)

    # Batch pad only (features stay unpadded, f32; cast to bf16 in-kernel).
    x_p = x if B_p == B else jnp.pad(x, ((0, B_p - B), (0, 0)))

    grid = (B_p // tb,)
    full = lambda shape: pl.BlockSpec(shape, lambda i: (0, 0))

    flops = 2 * B_p * (in_dim * h1_p + h1_p * h2_p + h2_p * out_p)
    bytes_accessed = (B_p * in_dim * 4                         # x read (f32)
                      + (w1.size + w2.size + w3.size) * 2      # bf16 weights
                      + (b1.size + b2.size + b3.size) * 4      # f32 biases
                      + B_p * out_dim * 4)                     # f32 output
    cost = pl.CostEstimate(flops=flops,
                           transcendentals=B_p * out_p,
                           bytes_accessed=bytes_accessed)

    out = pl.pallas_call(
        mlp_kernel,
        out_shape=jax.ShapeDtypeStruct((B_p, out_dim), jnp.float32),
        grid_spec=pltpu.PrefetchScalarGridSpec(
            num_scalar_prefetch=0,
            grid=grid,
            in_specs=[
                pl.BlockSpec((tb, in_dim), lambda i: (i, 0)),   # x tile (unpadded feats)
                full((in_dim, h1_p)), full((1, h1_p)),
                full((h1_p, h2_p)), full((1, h2_p)),
                full((h2_p, out_p)), full((1, out_p)),
            ],
            out_specs=pl.BlockSpec((tb, out_dim), lambda i: (i, 0)),
        ),
        compiler_params=pltpu.CompilerParams(
            dimension_semantics=("parallel",)),
        cost_estimate=cost,
    )(x_p, w1, b1, w2, b2, w3, b3)

    return out[:B, :]


def init_params(key, in_dim, hidden_dims, out_dim):
    """Deterministic init mimicking nn.Linear default (uniform +/- 1/sqrt(fan_in))."""
    dims = [in_dim] + list(hidden_dims) + [out_dim]
    params = {}
    for li, (fan_in, fan_out) in enumerate(zip(dims[:-1], dims[1:]), start=1):
        key, kw, kb = jax.random.split(key, 3)
        bound = 1.0 / jnp.sqrt(fan_in)
        params[f"w{li}"] = jax.random.uniform(
            kw, (fan_out, fan_in), jnp.float32, -bound, bound)
        params[f"b{li}"] = jax.random.uniform(
            kb, (fan_out,), jnp.float32, -bound, bound)
    return params


def mlp_reference_bf16(x, params):
    """Reference mirroring the kernel's bf16-operand / f32-accumulate numerics."""
    q = lambda a: a.astype(jnp.bfloat16).astype(jnp.float32)
    h = jnp.maximum(q(x) @ q(params["w1"].T) + params["b1"], 0.0)
    h = jnp.maximum(q(h) @ q(params["w2"].T) + params["b2"], 0.0)
    z = q(h) @ q(params["w3"].T) + params["b3"]
    return jax.nn.log_softmax(z, axis=1)


def mlp_reference_f32(x, params):
    h = jnp.maximum(x @ params["w1"].T + params["b1"], 0.0)
    h = jnp.maximum(h @ params["w2"].T + params["b2"], 0.0)
    z = h @ params["w3"].T + params["b3"]
    return jax.nn.log_softmax(z, axis=1)


if __name__ == "__main__":
    # MLP(in_dim=16, mlp_hidden_dims=[32, 32], output_dim=8,
    #     activation_type='relu', final_activation_type='logsoftmax', dropout=0)
    in_dim, hidden_dims, out_dim = 16, (32, 32), 8

    key = jax.random.PRNGKey(0)
    kx, kp, kx2 = jax.random.split(key, 3)
    params = init_params(kp, in_dim, hidden_dims, out_dim)
    prepared = prepare_params(params)   # one-time weight prep (hoisted)

    # Case 1: batch=64, default tile policy -> tb=16, grid=(4,) (pipelined,
    # shards across both v7x TensorCores).
    x = jax.random.normal(kx, (64, in_dim), jnp.float32)
    out = mlp_forward(x, prepared)
    jax.block_until_ready(out)
    assert out.shape == (64, out_dim)
    ref_q = mlp_reference_bf16(x, params)
    ref_f = mlp_reference_f32(x, params)
    assert jnp.allclose(out, ref_q, atol=1e-2, rtol=1e-2), "mismatch vs bf16 reference"
    assert jnp.allclose(out, ref_f, atol=5e-2, rtol=5e-2), "mismatch vs f32 reference"

    # Case 2: ragged batch (B=5, padded to one 8-row tile internally).
    x2 = jax.random.normal(kx2, (5, in_dim), jnp.float32)
    out2 = mlp_forward(x2, prepared)
    jax.block_until_ready(out2)
    assert out2.shape == (5, out_dim)
    assert jnp.allclose(out2, mlp_reference_bf16(x2, params), atol=1e-2, rtol=1e-2)

    # Case 3: explicit tile override still works (B=64, tb=32 -> grid=(2,)).
    out3 = mlp_forward(x, prepared, batch_tile=32)
    jax.block_until_ready(out3)
    assert jnp.allclose(out3, ref_q, atol=1e-2, rtol=1e-2)

    print("KERNEL_OK")
</pallas_src>

<mosaic_0001>
module attributes {stable_mosaic.version = 11 : i64} {
  func.func @mlp_kernel(%arg0: i32, %arg1: memref<16x16xf32, #tpu.memory_space<vmem>>, %arg2: memref<16x128xbf16, #tpu.memory_space<vmem>>, %arg3: memref<1x128xf32, #tpu.memory_space<vmem>>, %arg4: memref<128x128xbf16, #tpu.memory_space<vmem>>, %arg5: memref<1x128xf32, #tpu.memory_space<vmem>>, %arg6: memref<128x128xbf16, #tpu.memory_space<vmem>>, %arg7: memref<1x128xf32, #tpu.memory_space<vmem>>, %arg8: memref<16x8xf32, #tpu.memory_space<vmem>>) attributes {dimension_semantics = [#tpu.dimension_semantics<parallel>], iteration_bounds = array<i64: 4>, scalar_prefetch = 0 : i64, scratch_operands = 0 : i64, tpu.core_type = #tpu.core_type<tc>, window_params = [{transform_indices = @transform_0, window_bounds = array<i64: 16, 16>}, {pipeline_mode = #tpu.pipeline_mode<synchronous>, transform_indices = @transform_1, window_bounds = array<i64: 16, 128>}, {pipeline_mode = #tpu.pipeline_mode<synchronous>, transform_indices = @transform_2, window_bounds = array<i64: 1, 128>}, {pipeline_mode = #tpu.pipeline_mode<synchronous>, transform_indices = @transform_3, window_bounds = array<i64: 128, 128>}, {pipeline_mode = #tpu.pipeline_mode<synchronous>, transform_indices = @transform_4, window_bounds = array<i64: 1, 128>}, {pipeline_mode = #tpu.pipeline_mode<synchronous>, transform_indices = @transform_5, window_bounds = array<i64: 128, 128>}, {pipeline_mode = #tpu.pipeline_mode<synchronous>, transform_indices = @transform_6, window_bounds = array<i64: 1, 128>}, {transform_indices = @transform_7, window_bounds = array<i64: 16, 8>}]} {
    %c0 = arith.constant 0 : index
    %c0_0 = arith.constant 0 : index
    %0 = vector.load %arg1[%c0, %c0_0] : memref<16x16xf32, #tpu.memory_space<vmem>>, vector<16x16xf32>
    %1 = arith.truncf %0 : vector<16x16xf32> to vector<16x16xbf16>
    %c0_1 = arith.constant 0 : index
    %c0_2 = arith.constant 0 : index
    %2 = vector.load %arg2[%c0_1, %c0_2] : memref<16x128xbf16, #tpu.memory_space<vmem>>, vector<16x128xbf16>
    %cst = arith.constant dense<0.000000e+00> : vector<16x128xf32>
    %3 = tpu.matmul %1, %2, %cst {dimension_numbers = #tpu.dot_dimension_numbers<[1], [0], [0], [1], [0, 0, 1, 1], [], []>} : vector<16x16xbf16>, vector<16x128xbf16>, vector<16x128xf32> -> vector<16x128xf32>
    %c0_3 = arith.constant 0 : index
    %c0_4 = arith.constant 0 : index
    %4 = vector.load %arg3[%c0_3, %c0_4] : memref<1x128xf32, #tpu.memory_space<vmem>>, vector<1x128xf32>
    %5 = vector.broadcast %4 : vector<1x128xf32> to vector<16x128xf32>
    %6 = arith.addf %3, %5 : vector<16x128xf32>
    %cst_5 = arith.constant 0.000000e+00 : f32
    %7 = vector.broadcast %cst_5 : f32 to vector<16x128xf32>
    %8 = arith.maximumf %6, %7 : vector<16x128xf32>
    %9 = arith.truncf %8 : vector<16x128xf32> to vector<16x128xbf16>
    %c0_6 = arith.constant 0 : index
    %c0_7 = arith.constant 0 : index
    %10 = vector.load %arg4[%c0_6, %c0_7] : memref<128x128xbf16, #tpu.memory_space<vmem>>, vector<128x128xbf16>
    %cst_8 = arith.constant dense<0.000000e+00> : vector<16x128xf32>
    %11 = tpu.matmul %9, %10, %cst_8 {dimension_numbers = #tpu.dot_dimension_numbers<[1], [0], [0], [1], [0, 0, 1, 1], [], []>} : vector<16x128xbf16>, vector<128x128xbf16>, vector<16x128xf32> -> vector<16x128xf32>
    %c0_9 = arith.constant 0 : index
    %c0_10 = arith.constant 0 : index
    %12 = vector.load %arg5[%c0_9, %c0_10] : memref<1x128xf32, #tpu.memory_space<vmem>>, vector<1x128xf32>
    %13 = vector.broadcast %12 : vector<1x128xf32> to vector<16x128xf32>
    %14 = arith.addf %11, %13 : vector<16x128xf32>
    %cst_11 = arith.constant 0.000000e+00 : f32
    %15 = vector.broadcast %cst_11 : f32 to vector<16x128xf32>
    %16 = arith.maximumf %14, %15 : vector<16x128xf32>
    %17 = arith.truncf %16 : vector<16x128xf32> to vector<16x128xbf16>
    %c0_12 = arith.constant 0 : index
    %c0_13 = arith.constant 0 : index
    %18 = vector.load %arg6[%c0_12, %c0_13] : memref<128x128xbf16, #tpu.memory_space<vmem>>, vector<128x128xbf16>
    %cst_14 = arith.constant dense<0.000000e+00> : vector<16x128xf32>
    %19 = tpu.matmul %17, %18, %cst_14 {dimension_numbers = #tpu.dot_dimension_numbers<[1], [0], [0], [1], [0, 0, 1, 1], [], []>} : vector<16x128xbf16>, vector<128x128xbf16>, vector<16x128xf32> -> vector<16x128xf32>
    %c0_15 = arith.constant 0 : index
    %c0_16 = arith.constant 0 : index
    %20 = vector.load %arg7[%c0_15, %c0_16] : memref<1x128xf32, #tpu.memory_space<vmem>>, vector<1x128xf32>
    %21 = vector.broadcast %20 : vector<1x128xf32> to vector<16x128xf32>
    %22 = arith.addf %19, %21 : vector<16x128xf32>
    %cst_17 = arith.constant dense<0xFF800000> : vector<16xf32>
    %23 = vector.multi_reduction <maximumf>, %22, %cst_17 [1] : vector<16x128xf32> to vector<16xf32>
    %24 = vector.shape_cast %23 : vector<16xf32> to vector<16x1xf32>
    %25 = vector.broadcast %24 : vector<16x1xf32> to vector<16x128xf32>
    %26 = arith.subf %22, %25 : vector<16x128xf32>
    %27 = math.exp %26 : vector<16x128xf32>
    %cst_18 = arith.constant dense<0.000000e+00> : vector<16xf32>
    %28 = vector.multi_reduction <add>, %27, %cst_18 [1] : vector<16x128xf32> to vector<16xf32>
    %29 = vector.shape_cast %28 : vector<16xf32> to vector<16x1xf32>
    %30 = math.log %29 : vector<16x1xf32>
    %31 = vector.broadcast %30 : vector<16x1xf32> to vector<16x128xf32>
    %32 = arith.subf %26, %31 : vector<16x128xf32>
    %33 = vector.extract_strided_slice %32 {offsets = [0, 0], sizes = [16, 8], strides = [1, 1]} : vector<16x128xf32> to vector<16x8xf32>
    %c0_19 = arith.constant 0 : index
    %c0_20 = arith.constant 0 : index
    %34 = vector.load %arg8[%c0_19, %c0_20] : memref<16x8xf32, #tpu.memory_space<vmem>>, vector<16x8xf32>
    tpu.vector_store %arg8[%c0_19, %c0_20], %33 {strides = array<i32>} : memref<16x8xf32, #tpu.memory_space<vmem>>, vector<16x8xf32>,
    return
  }
  func.func @transform_0(%arg0: i32) -> (i32, i32) {
    %c0_i32 = arith.constant 0 : i32
    %c0_i32_0 = arith.constant 0 : i32
    return %arg0, %c0_i32 : i32, i32
  }
  func.func @transform_1(%arg0: i32) -> (i32, i32) {
    %c0_i32 = arith.constant 0 : i32
    %c0_i32_0 = arith.constant 0 : i32
    %c0_i32_1 = arith.constant 0 : i32
    return %c0_i32, %c0_i32_0 : i32, i32
  }
  func.func @transform_2(%arg0: i32) -> (i32, i32) {
    %c0_i32 = arith.constant 0 : i32
    %c0_i32_0 = arith.constant 0 : i32
    %c0_i32_1 = arith.constant 0 : i32
    return %c0_i32, %c0_i32_0 : i32, i32
  }
  func.func @transform_3(%arg0: i32) -> (i32, i32) {
    %c0_i32 = arith.constant 0 : i32
    %c0_i32_0 = arith.constant 0 : i32
    %c0_i32_1 = arith.constant 0 : i32
    return %c0_i32, %c0_i32_0 : i32, i32
  }
  func.func @transform_4(%arg0: i32) -> (i32, i32) {
    %c0_i32 = arith.constant 0 : i32
    %c0_i32_0 = arith.constant 0 : i32
    %c0_i32_1 = arith.constant 0 : i32
    return %c0_i32, %c0_i32_0 : i32, i32
  }
  func.func @transform_5(%arg0: i32) -> (i32, i32) {
    %c0_i32 = arith.constant 0 : i32
    %c0_i32_0 = arith.constant 0 : i32
    %c0_i32_1 = arith.constant 0 : i32
    return %c0_i32, %c0_i32_0 : i32, i32
  }
  func.func @transform_6(%arg0: i32) -> (i32, i32) {
    %c0_i32 = arith.constant 0 : i32
    %c0_i32_0 = arith.constant 0 : i32
    %c0_i32_1 = arith.constant 0 : i32
    return %c0_i32, %c0_i32_0 : i32, i32
  }
  func.func @transform_7(%arg0: i32) -> (i32, i32) {
    %c0_i32 = arith.constant 0 : i32
    %c0_i32_0 = arith.constant 0 : i32
    return %arg0, %c0_i32 : i32, i32
  }
}

</mosaic_0001>

<bundles_post_ra>
// kernel: tpu_custom_call.1
= control target key start
LH: loop header
LB: loop body
LE: loop exit
PB: predicated region body
PF: predicated region fallthrough
CT: control target
= control target key end

     0   :  { %12 = vsyncpa [#allocation3], 0  ;;  %s915_s24 = smov 0   ;;  %s1040_s0 = inlined_call_operand.vmem [shape: f32[64,16], index: 0, kind: input, shape index: {}]   ;;  %s1041_s1 = inlined_call_operand.vmem [shape: bf16[16,128], index: 1, kind: input, shape index: {}]   ;;  %s1042_s2 = inlined_call_operand.vmem [shape: f32[1,128], index: 2, kind: input, shape index: {}]   ;;  %s1043_s3 = inlined_call_operand.vmem [shape: bf16[128,128], index: 3, kind: input, shape index: {}]   ;;  %s1044_s4 = inlined_call_operand.vmem [shape: f32[1,128], index: 4, kind: input, shape index: {}]   ;;  %s1045_s5 = inlined_call_operand.hbm [shape: bf16[128,128], index: 5, kind: input, shape index: {}]   ;;  %s1046_s6 = inlined_call_operand.vmem [shape: f32[1,128], index: 6, kind: input, shape index: {}]   ;;  %s1047_s7 = inlined_call_operand.vmem [shape: f32[64,8], index: 7, kind: output, shape index: {}]  }
   0x1 LB: > { %s682_s25 = sadd.s32 4294967295, %s868_s24   ;;  %p684_p0 = scmp.ge.s32.totalorder %s868_s24, 1  ;;  %s868_s24 = sphi %s915_s24, %s18_s24  }
   0x2   : > { %p201_p1 = scmp.lt.s32.totalorder %s868_s24, 5  ;;  %s870_s26 = smov [#allocation2]  }
   0x3   : > { %s225_s27 = sshll.u32 %s870_s26, 4  ;;  %p929_p3 = scmp.eq.s32.totalorder %s682_s25, 0  ;;  %s226_s27 = int_to_ptr.vmem [resolvable:$true] %s225_s27 }
   0x4   : > { %p923_p2 = pnand %p684_p0, %p201_p1  ;;  %s830_s10 = scalar_lea.hbm %s1045_s5, 1024 }
   0x5   : > { %s1052_s29 = scalar_select %p929_p3, 1, 0 }
   0x6   : > { %s1051_s28 = scalar_select %p923_p2, 1, 0 }
   0x7   : > { %p786_p4 = pneg %p923_p2  ;;  %p831_p6 = scmp.ne.s32.totalorder %s1045_s5, %s830_s10 }
   0x8   : > { %p837_p10 = scmp.lt.u32.totalorder %s830_s10, %s1045_s5 }
   0x9   : > { %p937_p5 = pnand %p929_p3, %p786_p4 }
   0xb   : > { %p832_p7 = pneg %p937_p5 }
   0xd   : > { %p833_p8 = pnand %p832_p7, %p831_p6 }
   0xf   : > { %p834_p9 = pneg %p833_p8 }
  0x11   : > { %p839_p11 = pnand %p837_p10, %p834_p9 }
  0x13   : > { %842 = shalt.err (!%p839_p11)
}
  0x14   : > { %s843_s15 = scalar_lea.vmem %s226_s27, 1024  ;;  %p851_p1 = scmp.lt.s32.totalorder %s226_s27, %s226_s27 }
  0x15   : > { %p844_p12 = scmp.ne.s32.totalorder %s226_s27, %s843_s15  ;;  %p852_p4 = scmp.lt.s32.totalorder %s843_s15, %s843_s15 }
  0x17   : > { %p846_p13 = pnand %p844_p12, %p832_p7  ;;  %p853_p3 = por %p852_p4, %p851_p1 }
  0x19   : > { %p847_p0 = pneg %p846_p13 }
  0x1b   : > { %p854_p2 = pnand %p853_p3, %p847_p0 }
  0x1d   : > { %857 = shalt.err (!%p854_p2)
}
  0x1e   : > { %s871_s16 = smov 64   ;;  %s872_s17 = smov 4  }
  0x1f   : > { %789 = dma.hbm_to_vmem [thread:$0]  (!%p937_p5), %s1045_s5, 1024, %s226_s27, [#allocation3], %s871_s16, %s871_s16, %s872_s17  }
  0x20   : > { %p1054_p6 = scmp.ne.s32.totalorder %s1051_s28, 0 }
  0x21   : > { %p1055_p8 = scmp.ne.s32.totalorder (!%p1054_p6), %s1052_s29, 0 }
  0x22   : > { %253 = sbr.rel (%p1054_p6) target bundleno = 1024 (0x400), region = 48 }
  0x29   : > { %863 = dma.done.wait (%p1055_p8), [#allocation3], 1024  }
  0x2a   : > { %865 = vsyncadd (%p1055_p8), [#allocation3], 4294966272  ;;  %s689_s20 = sshll.u32 %s682_s25, 1  ;;  %v873_v0 = vmov 0.0   ;;  %vm874_vm0 = vmmov 0   ;;  %v805_v1 = vld [vmem:[%s1041_s1] sm:$0xff]  }
  0x2b   : > { %736 = vmatprep.subr.bf16.mxu0 %v873_v0  ;;  %738 = vmatprep.mubr.msk.bf16.mxu0 %vm874_vm0, %v873_v0  ;;  %p286_p2 = scmp.lt.s32.totalorder %s689_s20, 7  ;;  %vm316_vm1 = vcmask 130048   ;;  %v806_v5 = vld [vmem:[%s1043_s3] sm:$0xff]   ;;  %v807_v6 = vld [vmem:[%s1043_s3 + $0x8] sm:$0xff]   ;;  %v808_v7 = vld [vmem:[%s1043_s3 + $0x10] sm:$0xff]   ;;  %vm611_vm2 = vcmask 64512  }
  0x2c   : > { %742 = vmatprep.subr.bf16.mxu1 %v873_v0  ;;  %758 = vmatprep.mubr.msk.bf16.mxu1 %vm874_vm0, %v873_v0  ;;  %v809_v8 = vld [vmem:[%s1043_s3 + $0x18] sm:$0xff]   ;;  %v810_v9 = vld [vmem:[%s1043_s3 + $0x20] sm:$0xff]   ;;  %v811_v10 = vld [vmem:[%s1043_s3 + $0x28] sm:$0xff]  }
  0x2d   : > { %s1057_s20 = smov (!%p286_p2, %s689_s20), 7  ;;  %737 = vmatpush3.bf16.msra.mxu0 %v805_v1  ;;  %743 = vmatpush3.bf16.msra.mxu1 %v806_v5  ;;  %v812_v11 = vld [vmem:[%s1043_s3 + $0x30] sm:$0xff]   ;;  %v813_v12 = vld [vmem:[%s1043_s3 + $0x38] sm:$0xff]   ;;  %v814_v13 = vld [vmem:[#allocation2] sm:$0xff]  }
  0x2e   : > { %s690_s21 = sshll.u32 %s1057_s20, 3  ;;  %762 = vmatprep.subr.bf16.mxu0 %v873_v0  ;;  %744 = vmatprep.subr.bf16.mxu1 %v873_v0  ;;  %v815_v14 = vld [vmem:[#allocation2 + $0x8] sm:$0xff]   ;;  %v816_v15 = vld [vmem:[#allocation2 + $0x10] sm:$0xff]   ;;  %v817_v16 = vld [vmem:[#allocation2 + $0x18] sm:$0xff]  }
  0x2f   : > { %s289_s25 = scalar_lea.vmem %s1040_s0, %s690_s21  ;;  %v818_v17 = vld [vmem:[#allocation2 + $0x20] sm:$0xff]   ;;  %v819_v18 = vld [vmem:[#allocation2 + $0x28] sm:$0xff]   ;;  %v820_v29 = vld [vmem:[#allocation2 + $0x30] sm:$0xff]   ;;  %s295_s9 = scalar_lea.vmem %s1047_s7, %s690_s21 }
  0x30   : > { %v298_v2 = vld [vmem:[%s289_s25] sm:$0xff]  ;;  %v299_v3 = vld [vmem:[%s289_s25 + $0x8] sm:$0xff]  ;;  %v821_v30 = vld [vmem:[#allocation2 + $0x38] sm:$0xff]  }
  0x31   : > { %v300_v4 = vpack.c.bf16 %v299_v3, %v298_v2  ;;  %745 = vmatpush3.bf16.msra.mxu1 %v807_v6  ;;  %v693_v19 = vld [vmem:[%s1042_s2] ss:$0 sm:$0xff] }
  0x32   : > { %746 = vmatprep.subr.bf16.mxu1 %v873_v0  ;;  %v696_v31 = vld [vmem:[%s1044_s4] ss:$0 sm:$0xff] }
  0x33   : > { %739 = vmatmul.mubr.msk.bf16.vlgmr.msra.gmra.mrb[0].mxu0 %vm316_vm1, %v300_v4  ;;  %v705_v41 = vld [vmem:[%s1046_s6] ss:$0 sm:$0xff] }
  0x34   : > { %778 = vmatprep.mubr.msk.bf16.mxu0 %vm874_vm0, %v873_v0  ;;  %763 = vmatpush3.bf16.msra.mxu0 %v814_v13 }
  0x35   : > { %747 = vmatpush3.bf16.msra.mxu1 %v808_v7  ;;  %764 = vmatprep.subr.bf16.mxu0 %v873_v0 }
  0x36   : > { %748 = vmatprep.subr.bf16.mxu1 %v873_v0 }
  0x38   : > { %765 = vmatpush3.bf16.msra.mxu0 %v815_v14 }
  0x39   : > { %749 = vmatpush3.bf16.msra.mxu1 %v809_v8  ;;  %766 = vmatprep.subr.bf16.mxu0 %v873_v0 }
  0x3a   : > { %750 = vmatprep.subr.bf16.mxu1 %v873_v0 }
  0x3c   : > { %767 = vmatpush3.bf16.msra.mxu0 %v816_v15 }
  0x3d   : > { %751 = vmatpush3.bf16.msra.mxu1 %v810_v9  ;;  %768 = vmatprep.subr.bf16.mxu0 %v873_v0 }
  0x3e   : > { %752 = vmatprep.subr.bf16.mxu1 %v873_v0 }
  0x40   : > { %769 = vmatpush3.bf16.msra.mxu0 %v817_v16 }
  0x41   : > { %753 = vmatpush3.bf16.msra.mxu1 %v811_v10  ;;  %770 = vmatprep.subr.bf16.mxu0 %v873_v0 }
  0x42   : > { %754 = vmatprep.subr.bf16.mxu1 %v873_v0 }
  0x44   : > { %771 = vmatpush3.bf16.msra.mxu0 %v818_v17 }
  0x45   : > { %755 = vmatpush3.bf16.msra.mxu1 %v812_v11  ;;  %772 = vmatprep.subr.bf16.mxu0 %v873_v0 }
  0x46   : > { %756 = vmatprep.subr.bf16.mxu1 %v873_v0 }
  0x48   : > { %773 = vmatpush3.bf16.msra.mxu0 %v819_v18 }
  0x49   : > { %757 = vmatpush3.bf16.msra.mxu1 %v813_v12  ;;  %774 = vmatprep.subr.bf16.mxu0 %v873_v0 }
  0x4c   : > { %775 = vmatpush3.bf16.msra.mxu0 %v820_v29 }
  0x4d   : > { %776 = vmatprep.subr.bf16.mxu0 %v873_v0 }
  0x50   : > { %777 = vmatpush3.bf16.msra.mxu0 %v821_v30 }
 0x106   : > { %v354_v20 = vpop.f32.mrb[0].mxu0 }
 0x107   : > { %v355_v21 = vadd.f32 %v693_v19, %v354_v20  ;;  %v740_v22 = vpop.f32.mrb[1].mxu0 }
 0x108   : > { %v357_v23 = vpop.f32.mrb[2].mxu0 }
 0x109   : > { %v358_v24 = vadd.f32 %v693_v19, %v357_v23  ;;  %v741_v25 = vpop.f32.mrb[3].mxu0  ;;  %v361_v26 = vmax.f32 %v355_v21, 0.0 }
 0x10b   : > { %v362_v27 = vmax.f32 %v358_v24, 0.0 }
 0x10d   : > { %v363_v28 = vpack.c.bf16 %v362_v27, %v361_v26 }
 0x10f   : > { %759 = vmatmul.mubr.bf16.vlgmr.msra.gmra.mrb[0].mxu1 %v363_v28 }
 0x1e2   : > { %v469_v32 = vpop.f32.mrb[0].mxu1 }
 0x1e3   : > { %v470_v33 = vadd.f32 %v696_v31, %v469_v32  ;;  %v760_v34 = vpop.f32.mrb[1].mxu1 }
 0x1e4   : > { %v472_v35 = vpop.f32.mrb[2].mxu1 }
 0x1e5   : > { %v473_v36 = vadd.f32 %v696_v31, %v472_v35  ;;  %v761_v37 = vpop.f32.mrb[3].mxu1  ;;  %v476_v38 = vmax.f32 %v470_v33, 0.0 }
 0x1e7   : > { %v477_v39 = vmax.f32 %v473_v36, 0.0 }
 0x1e9   : > { %v478_v40 = vpack.c.bf16 %v477_v39, %v476_v38 }
 0x1eb   : > { %779 = vmatmul.mubr.bf16.vlgmr.msra.gmra.mrb[4].mxu0 %v478_v40 }
 0x2be   : > { %v584_v42 = vpop.f32.mrb[4].mxu0 }
 0x2bf   : > { %v585_v43 = vadd.f32 %v705_v41, %v584_v42  ;;  %v780_v44 = vpop.f32.mrb[5].mxu0 }
 0x2c0   : > { %v587_v45 = vpop.f32.mrb[6].mxu0 }
 0x2c1   : > { %591 = vmax.xlane.f32.xlu0 %v585_v43  ;;  %v781_v46 = vpop.f32.mrb[7].mxu0  ;;  %v588_v47 = vadd.f32 %v705_v41, %v587_v45 }
 0x2c5   : > { %593 = vmax.xlane.f32.xlu0 %v588_v47 }
 0x34e   : > { %v592_v48 = vpop.xlane.xlu0 %591 }
 0x34f   : > { %v595_v49 = vsub.f32 %v585_v43, %v592_v48 }
 0x351   : > { %v597_v50 = vmul.f32 1.442695, %v595_v49 }
 0x352   : > { %v594_v51 = vpop.xlane.xlu0 %593 }
 0x353   : > { %v596_v52 = vsub.f32 %v588_v47, %v594_v51  ;;  %822 = vpow2.f32 %v597_v50 }
 0x355   : > { %v599_v53 = vmul.f32 1.442695, %v596_v52 }
 0x357   : > { %824 = vpow2.f32 %v599_v53 }
 0x35d   : > { %v823_v54 = vpop.eup %822 }
 0x35e   : > { %601 = vadd.xlane.f32.xlu1 %v823_v54 }
 0x361   : > { %v825_v55 = vpop.eup %824 }
 0x362   : > { %603 = vadd.xlane.f32.xlu1 %v825_v55 }
 0x3eb   : > { %v602_v56 = vpop.xlane.xlu1 %601 }
 0x3ec   : > { %826 = vlog2.f32 %v602_v56 }
 0x3ef   : > { %v604_v57 = vpop.xlane.xlu1 %603 }
 0x3f0   : > { %828 = vlog2.f32 %v604_v57 }
 0x3f6   : > { %v827_v58 = vpop.eup %826 }
 0x3f7   : > { %v606_v59 = vmul.f32 0.6931472, %v827_v58 }
 0x3f9   : > { %v609_v60 = vsub.f32 %v595_v49, %v606_v59 }
 0x3fa   : > { %v829_v61 = vpop.eup %828 }
 0x3fb   : > { %612 = vst.msk [vmem:[%s295_s9] sm:$0xff] %vm611_vm2, %v609_v60  ;;  %v608_v62 = vmul.f32 0.6931472, %v829_v61 }
 0x3fd   : > { %v610_v63 = vsub.f32 %v596_v52, %v608_v62 }
 0x3ff   : > { %613 = vst.msk [vmem:[%s295_s9 + $0x8] sm:$0xff] %vm611_vm2, %v610_v63 }
 0x400 PF: > { %s18_s24 = sadd.s32 1, %s868_s24  }
 0x401   : > { %p15_p3 = scmp.ge.s32.totalorder %s18_s24, 6  }
 0x403   :  { %17 = sbr.rel (!%p15_p3) target bundleno = 1 (0x1), region = 83 }
 0x40a   :  { %636 = vsyncpa [#allocation3], 1 }
 0x40b   :  { %638 = vsyncpa [#allocation3 + $0x1], 1 }

</bundles_post_ra>
